<compile_context>
chip_gen: v6e
topology: v6e:2x2x1
jax: 0.10.0
libtpu: 0.0.40
codegen_flags: <defaults>
</compile_context>

<pallas_src>
import jax
import jax.numpy as jnp
from jax.experimental import pallas as pl
from jax.experimental.pallas import tpu as pltpu


def mlp_kernel(x_ref, w1_ref, b1_ref, w2_ref, b2_ref, o_ref):
    # x_ref : (2, TR, L) VMEM tile -- feature axis first, batch fills the
    #         (sublane=TR, lane=L) plane, so x0/x1 are dense (8,128) vreg slabs.
    # w1_ref: (16,) f32 SMEM  -- fc1.weight flattened row-major (w1[j,i] -> w1_ref[2*j+i])
    # b1_ref: (8,)  f32 SMEM
    # w2_ref: (8,)  f32 SMEM  -- fc2.weight flattened (w2[0,j] -> w2_ref[j])
    # b2_ref: (1,)  f32 SMEM
    # o_ref : (TR, L) VMEM output tile (lane-dense, full-width unmasked stores).
    x0 = x_ref[0]  # (TR, L) feature 0 across the batch
    x1 = x_ref[1]  # (TR, L) feature 1 across the batch

    # Fold the output bias into the accumulator init (saves a full-tile add).
    acc = jnp.full(o_ref.shape, b2_ref[0], jnp.float32)
    # Static unroll over the 8 hidden units: pure VPU multiply-adds, no MXU.
    for j in range(8):
        h = w1_ref[2 * j] * x0 + w1_ref[2 * j + 1] * x1 + b1_ref[j]
        h = jnp.maximum(h, 0.1 * h)  # LeakyReLU(0.1); identical for slope in (0,1)
        acc = acc + w2_ref[j] * h
    o_ref[...] = acc


def mlp_forward_slab(x_slab, w1, b1, w2, b2, *, tile_rows):
    """Run the kernel on already feature-major, padded data.

    x_slab: (2, R, L) f32 with L a multiple of 128, R a multiple of tile_rows,
            tile_rows a multiple of 8. Returns (R, L) f32.
    Callers that keep activations in this layout avoid the (B,2) -> slab
    conversion pass entirely.
    """
    _, rows_total, lane = x_slab.shape
    n_tiles = rows_total // tile_rows

    return pl.pallas_call(
        mlp_kernel,
        out_shape=jax.ShapeDtypeStruct((rows_total, lane), jnp.float32),
        grid=(n_tiles,),
        in_specs=[
            # Batch-tiled input, VMEM, auto double-buffered across grid steps.
            pl.BlockSpec((2, tile_rows, lane), lambda i: (0, i, 0)),
            # Tiny weight/bias vectors go to SMEM (loaded once, read as scalars).
            pl.BlockSpec(memory_space=pltpu.SMEM),
            pl.BlockSpec(memory_space=pltpu.SMEM),
            pl.BlockSpec(memory_space=pltpu.SMEM),
            pl.BlockSpec(memory_space=pltpu.SMEM),
        ],
        out_specs=pl.BlockSpec((tile_rows, lane), lambda i: (i, 0)),
        compiler_params=pltpu.CompilerParams(
            # Batch tiles are independent -> shard across TensorCores on v7x.
            dimension_semantics=("parallel",),
        ),
    )(
        x_slab,
        w1.reshape(-1).astype(jnp.float32),
        b1.astype(jnp.float32),
        w2.reshape(-1).astype(jnp.float32),
        b2.astype(jnp.float32),
    )


def mlp_forward(x, w1, b1, w2, b2, *, lane=512, tile_rows=64):
    """PyTorch-layout path. x: (B, 2) f32; returns (B, 1) f32.

    Does the feature-major layout conversion + padding once (a separate XLA
    pass); keep activations in the (2, R, L) slab layout and call
    `mlp_forward_slab` directly to avoid it.
    """
    B = x.shape[0]

    # --- choose a layout: lane a multiple of 128, rows a multiple of 8, and
    #     shrink both for small batches so padding stays tiny.
    lane = max(128, min(lane, 128 * pl.cdiv(B, 128)))
    rows_needed = pl.cdiv(B, lane)
    tile_rows = max(8, min(tile_rows, 8 * pl.cdiv(rows_needed, 8)))
    # Prefer >=2 grid steps when the batch is big enough (keeps both v7x
    # TensorCores issuing DMAs once the kernel is HBM-bound).
    if rows_needed >= 16 and pl.cdiv(rows_needed, tile_rows) < 2:
        tile_rows = max(8, 8 * pl.cdiv(rows_needed, 16))
    n_tiles = pl.cdiv(rows_needed, tile_rows)
    rows_total = n_tiles * tile_rows
    b_pad = rows_total * lane

    # Feature-major + zero pad + fold into the (2, R, L) slab.
    x_fm = x.astype(jnp.float32).T                      # (2, B)
    x_fm = jnp.pad(x_fm, ((0, 0), (0, b_pad - B)))      # (2, b_pad)
    x_slab = x_fm.reshape(2, rows_total, lane)          # (2, R, L)

    out = mlp_forward_slab(x_slab, w1, b1, w2, b2, tile_rows=tile_rows)

    # Drop padding and restore the PyTorch (B, 1) output layout.
    return out.reshape(-1)[:B].reshape(B, 1)


def init_params(key):
    # PyTorch nn.Linear default init: U(-1/sqrt(fan_in), 1/sqrt(fan_in))
    k1, k2, k3, k4 = jax.random.split(key, 4)
    bound1 = 1.0 / jnp.sqrt(2.0)
    bound2 = 1.0 / jnp.sqrt(8.0)
    w1 = jax.random.uniform(k1, (8, 2), jnp.float32, -bound1, bound1)   # fc1.weight
    b1 = jax.random.uniform(k2, (8,), jnp.float32, -bound1, bound1)     # fc1.bias
    w2 = jax.random.uniform(k3, (1, 8), jnp.float32, -bound2, bound2)   # fc2.weight
    b2 = jax.random.uniform(k4, (1,), jnp.float32, -bound2, bound2)     # fc2.bias
    return w1, b1, w2, b2


def ref_forward(x, w1, b1, w2, b2):
    h = x @ w1.T + b1
    h = jnp.where(h >= 0, h, 0.1 * h)
    return h @ w2.T + b2


if __name__ == "__main__":
    key = jax.random.PRNGKey(0)
    w1, b1, w2, b2 = init_params(key)

    # 1) XOR-style input: batch of 4 two-feature rows (single small tile).
    x = jnp.array([[0.0, 0.0], [0.0, 1.0], [1.0, 0.0], [1.0, 1.0]], dtype=jnp.float32)
    out = jax.block_until_ready(mlp_forward(x, w1, b1, w2, b2))
    ref = ref_forward(x, w1, b1, w2, b2)
    assert out.shape == (4, 1)
    assert jnp.allclose(out, ref, atol=1e-5), (out, ref)

    # 2) Non-tile-multiple batch: exercises padding + dense (rows, lane) layout.
    xb = jax.random.uniform(jax.random.PRNGKey(1), (1000, 2), jnp.float32)
    outb = jax.block_until_ready(mlp_forward(xb, w1, b1, w2, b2))
    refb = ref_forward(xb, w1, b1, w2, b2)
    assert outb.shape == (1000, 1)
    assert jnp.allclose(outb, refb, atol=1e-5)

    # 3) Forced multi-step grid (small lane) -> exercises the "parallel" grid
    #    axis with >=2 tiles plus the ragged tail.
    xc = jax.random.uniform(jax.random.PRNGKey(2), (3000, 2), jnp.float32)
    outc = jax.block_until_ready(mlp_forward(xc, w1, b1, w2, b2, lane=128, tile_rows=64))
    refc = ref_forward(xc, w1, b1, w2, b2)
    assert outc.shape == (3000, 1)
    assert jnp.allclose(outc, refc, atol=1e-5)

    print("KERNEL_OK")
</pallas_src>

<mosaic_0001>
module attributes {stable_mosaic.version = 11 : i64} {
  func.func @mlp_kernel(%arg0: i32, %arg1: memref<2x8x128xf32, #tpu.memory_space<vmem>>, %arg2: memref<16xf32, #tpu.memory_space<smem>>, %arg3: memref<8xf32, #tpu.memory_space<smem>>, %arg4: memref<8xf32, #tpu.memory_space<smem>>, %arg5: memref<1xf32, #tpu.memory_space<smem>>, %arg6: memref<8x128xf32, #tpu.memory_space<vmem>>) attributes {dimension_semantics = [#tpu.dimension_semantics<parallel>], iteration_bounds = array<i64: 1>, scalar_prefetch = 0 : i64, scratch_operands = 0 : i64, tpu.core_type = #tpu.core_type<tc>, window_params = [{transform_indices = @transform_0, window_bounds = array<i64: 2, 8, 128>}, {transform_indices = @transform_1, window_bounds = array<i64: 16>}, {transform_indices = @transform_2, window_bounds = array<i64: 8>}, {transform_indices = @transform_3, window_bounds = array<i64: 8>}, {transform_indices = @transform_4, window_bounds = array<i64: 1>}, {transform_indices = @transform_5, window_bounds = array<i64: 8, 128>}]} {
    %c0 = arith.constant 0 : index
    %c0_0 = arith.constant 0 : index
    %c0_1 = arith.constant 0 : index
    %0 = vector.load %arg1[%c0, %c0_0, %c0_1] : memref<2x8x128xf32, #tpu.memory_space<vmem>>, vector<1x8x128xf32>
    %1 = vector.shape_cast %0 : vector<1x8x128xf32> to vector<8x128xf32>
    %c1 = arith.constant 1 : index
    %c0_2 = arith.constant 0 : index
    %c0_3 = arith.constant 0 : index
    %2 = vector.load %arg1[%c1, %c0_2, %c0_3] : memref<2x8x128xf32, #tpu.memory_space<vmem>>, vector<1x8x128xf32>
    %3 = vector.shape_cast %2 : vector<1x8x128xf32> to vector<8x128xf32>
    %c0_4 = arith.constant 0 : index
    %4 = memref.load %arg5[%c0_4] : memref<1xf32, #tpu.memory_space<smem>>
    %5 = vector.broadcast %4 : f32 to vector<8x128xf32>
    %c0_5 = arith.constant 0 : index
    %6 = memref.load %arg2[%c0_5] : memref<16xf32, #tpu.memory_space<smem>>
    %7 = vector.broadcast %6 : f32 to vector<8x128xf32>
    %8 = arith.mulf %7, %1 : vector<8x128xf32>
    %c1_6 = arith.constant 1 : index
    %9 = memref.load %arg2[%c1_6] : memref<16xf32, #tpu.memory_space<smem>>
    %10 = vector.broadcast %9 : f32 to vector<8x128xf32>
    %11 = arith.mulf %10, %3 : vector<8x128xf32>
    %12 = arith.addf %8, %11 : vector<8x128xf32>
    %c0_7 = arith.constant 0 : index
    %13 = memref.load %arg3[%c0_7] : memref<8xf32, #tpu.memory_space<smem>>
    %14 = vector.broadcast %13 : f32 to vector<8x128xf32>
    %15 = arith.addf %12, %14 : vector<8x128xf32>
    %cst = arith.constant 1.000000e-01 : f32
    %16 = vector.broadcast %cst : f32 to vector<8x128xf32>
    %17 = arith.mulf %16, %15 : vector<8x128xf32>
    %18 = arith.maximumf %15, %17 : vector<8x128xf32>
    %c0_8 = arith.constant 0 : index
    %19 = memref.load %arg4[%c0_8] : memref<8xf32, #tpu.memory_space<smem>>
    %20 = vector.broadcast %19 : f32 to vector<8x128xf32>
    %21 = arith.mulf %20, %18 : vector<8x128xf32>
    %22 = arith.addf %5, %21 : vector<8x128xf32>
    %c2 = arith.constant 2 : index
    %23 = memref.load %arg2[%c2] : memref<16xf32, #tpu.memory_space<smem>>
    %24 = vector.broadcast %23 : f32 to vector<8x128xf32>
    %25 = arith.mulf %24, %1 : vector<8x128xf32>
    %c3 = arith.constant 3 : index
    %26 = memref.load %arg2[%c3] : memref<16xf32, #tpu.memory_space<smem>>
    %27 = vector.broadcast %26 : f32 to vector<8x128xf32>
    %28 = arith.mulf %27, %3 : vector<8x128xf32>
    %29 = arith.addf %25, %28 : vector<8x128xf32>
    %c1_9 = arith.constant 1 : index
    %30 = memref.load %arg3[%c1_9] : memref<8xf32, #tpu.memory_space<smem>>
    %31 = vector.broadcast %30 : f32 to vector<8x128xf32>
    %32 = arith.addf %29, %31 : vector<8x128xf32>
    %cst_10 = arith.constant 1.000000e-01 : f32
    %33 = vector.broadcast %cst_10 : f32 to vector<8x128xf32>
    %34 = arith.mulf %33, %32 : vector<8x128xf32>
    %35 = arith.maximumf %32, %34 : vector<8x128xf32>
    %c1_11 = arith.constant 1 : index
    %36 = memref.load %arg4[%c1_11] : memref<8xf32, #tpu.memory_space<smem>>
    %37 = vector.broadcast %36 : f32 to vector<8x128xf32>
    %38 = arith.mulf %37, %35 : vector<8x128xf32>
    %39 = arith.addf %22, %38 : vector<8x128xf32>
    %c4 = arith.constant 4 : index
    %40 = memref.load %arg2[%c4] : memref<16xf32, #tpu.memory_space<smem>>
    %41 = vector.broadcast %40 : f32 to vector<8x128xf32>
    %42 = arith.mulf %41, %1 : vector<8x128xf32>
    %c5 = arith.constant 5 : index
    %43 = memref.load %arg2[%c5] : memref<16xf32, #tpu.memory_space<smem>>
    %44 = vector.broadcast %43 : f32 to vector<8x128xf32>
    %45 = arith.mulf %44, %3 : vector<8x128xf32>
    %46 = arith.addf %42, %45 : vector<8x128xf32>
    %c2_12 = arith.constant 2 : index
    %47 = memref.load %arg3[%c2_12] : memref<8xf32, #tpu.memory_space<smem>>
    %48 = vector.broadcast %47 : f32 to vector<8x128xf32>
    %49 = arith.addf %46, %48 : vector<8x128xf32>
    %cst_13 = arith.constant 1.000000e-01 : f32
    %50 = vector.broadcast %cst_13 : f32 to vector<8x128xf32>
    %51 = arith.mulf %50, %49 : vector<8x128xf32>
    %52 = arith.maximumf %49, %51 : vector<8x128xf32>
    %c2_14 = arith.constant 2 : index
    %53 = memref.load %arg4[%c2_14] : memref<8xf32, #tpu.memory_space<smem>>
    %54 = vector.broadcast %53 : f32 to vector<8x128xf32>
    %55 = arith.mulf %54, %52 : vector<8x128xf32>
    %56 = arith.addf %39, %55 : vector<8x128xf32>
    %c6 = arith.constant 6 : index
    %57 = memref.load %arg2[%c6] : memref<16xf32, #tpu.memory_space<smem>>
    %58 = vector.broadcast %57 : f32 to vector<8x128xf32>
    %59 = arith.mulf %58, %1 : vector<8x128xf32>
    %c7 = arith.constant 7 : index
    %60 = memref.load %arg2[%c7] : memref<16xf32, #tpu.memory_space<smem>>
    %61 = vector.broadcast %60 : f32 to vector<8x128xf32>
    %62 = arith.mulf %61, %3 : vector<8x128xf32>
    %63 = arith.addf %59, %62 : vector<8x128xf32>
    %c3_15 = arith.constant 3 : index
    %64 = memref.load %arg3[%c3_15] : memref<8xf32, #tpu.memory_space<smem>>
    %65 = vector.broadcast %64 : f32 to vector<8x128xf32>
    %66 = arith.addf %63, %65 : vector<8x128xf32>
    %cst_16 = arith.constant 1.000000e-01 : f32
    %67 = vector.broadcast %cst_16 : f32 to vector<8x128xf32>
    %68 = arith.mulf %67, %66 : vector<8x128xf32>
    %69 = arith.maximumf %66, %68 : vector<8x128xf32>
    %c3_17 = arith.constant 3 : index
    %70 = memref.load %arg4[%c3_17] : memref<8xf32, #tpu.memory_space<smem>>
    %71 = vector.broadcast %70 : f32 to vector<8x128xf32>
    %72 = arith.mulf %71, %69 : vector<8x128xf32>
    %73 = arith.addf %56, %72 : vector<8x128xf32>
    %c8 = arith.constant 8 : index
    %74 = memref.load %arg2[%c8] : memref<16xf32, #tpu.memory_space<smem>>
    %75 = vector.broadcast %74 : f32 to vector<8x128xf32>
    %76 = arith.mulf %75, %1 : vector<8x128xf32>
    %c9 = arith.constant 9 : index
    %77 = memref.load %arg2[%c9] : memref<16xf32, #tpu.memory_space<smem>>
    %78 = vector.broadcast %77 : f32 to vector<8x128xf32>
    %79 = arith.mulf %78, %3 : vector<8x128xf32>
    %80 = arith.addf %76, %79 : vector<8x128xf32>
    %c4_18 = arith.constant 4 : index
    %81 = memref.load %arg3[%c4_18] : memref<8xf32, #tpu.memory_space<smem>>
    %82 = vector.broadcast %81 : f32 to vector<8x128xf32>
    %83 = arith.addf %80, %82 : vector<8x128xf32>
    %cst_19 = arith.constant 1.000000e-01 : f32
    %84 = vector.broadcast %cst_19 : f32 to vector<8x128xf32>
    %85 = arith.mulf %84, %83 : vector<8x128xf32>
    %86 = arith.maximumf %83, %85 : vector<8x128xf32>
    %c4_20 = arith.constant 4 : index
    %87 = memref.load %arg4[%c4_20] : memref<8xf32, #tpu.memory_space<smem>>
    %88 = vector.broadcast %87 : f32 to vector<8x128xf32>
    %89 = arith.mulf %88, %86 : vector<8x128xf32>
    %90 = arith.addf %73, %89 : vector<8x128xf32>
    %c10 = arith.constant 10 : index
    %91 = memref.load %arg2[%c10] : memref<16xf32, #tpu.memory_space<smem>>
    %92 = vector.broadcast %91 : f32 to vector<8x128xf32>
    %93 = arith.mulf %92, %1 : vector<8x128xf32>
    %c11 = arith.constant 11 : index
    %94 = memref.load %arg2[%c11] : memref<16xf32, #tpu.memory_space<smem>>
    %95 = vector.broadcast %94 : f32 to vector<8x128xf32>
    %96 = arith.mulf %95, %3 : vector<8x128xf32>
    %97 = arith.addf %93, %96 : vector<8x128xf32>
    %c5_21 = arith.constant 5 : index
    %98 = memref.load %arg3[%c5_21] : memref<8xf32, #tpu.memory_space<smem>>
    %99 = vector.broadcast %98 : f32 to vector<8x128xf32>
    %100 = arith.addf %97, %99 : vector<8x128xf32>
    %cst_22 = arith.constant 1.000000e-01 : f32
    %101 = vector.broadcast %cst_22 : f32 to vector<8x128xf32>
    %102 = arith.mulf %101, %100 : vector<8x128xf32>
    %103 = arith.maximumf %100, %102 : vector<8x128xf32>
    %c5_23 = arith.constant 5 : index
    %104 = memref.load %arg4[%c5_23] : memref<8xf32, #tpu.memory_space<smem>>
    %105 = vector.broadcast %104 : f32 to vector<8x128xf32>
    %106 = arith.mulf %105, %103 : vector<8x128xf32>
    %107 = arith.addf %90, %106 : vector<8x128xf32>
    %c12 = arith.constant 12 : index
    %108 = memref.load %arg2[%c12] : memref<16xf32, #tpu.memory_space<smem>>
    %109 = vector.broadcast %108 : f32 to vector<8x128xf32>
    %110 = arith.mulf %109, %1 : vector<8x128xf32>
    %c13 = arith.constant 13 : index
    %111 = memref.load %arg2[%c13] : memref<16xf32, #tpu.memory_space<smem>>
    %112 = vector.broadcast %111 : f32 to vector<8x128xf32>
    %113 = arith.mulf %112, %3 : vector<8x128xf32>
    %114 = arith.addf %110, %113 : vector<8x128xf32>
    %c6_24 = arith.constant 6 : index
    %115 = memref.load %arg3[%c6_24] : memref<8xf32, #tpu.memory_space<smem>>
    %116 = vector.broadcast %115 : f32 to vector<8x128xf32>
    %117 = arith.addf %114, %116 : vector<8x128xf32>
    %cst_25 = arith.constant 1.000000e-01 : f32
    %118 = vector.broadcast %cst_25 : f32 to vector<8x128xf32>
    %119 = arith.mulf %118, %117 : vector<8x128xf32>
    %120 = arith.maximumf %117, %119 : vector<8x128xf32>
    %c6_26 = arith.constant 6 : index
    %121 = memref.load %arg4[%c6_26] : memref<8xf32, #tpu.memory_space<smem>>
    %122 = vector.broadcast %121 : f32 to vector<8x128xf32>
    %123 = arith.mulf %122, %120 : vector<8x128xf32>
    %124 = arith.addf %107, %123 : vector<8x128xf32>
    %c14 = arith.constant 14 : index
    %125 = memref.load %arg2[%c14] : memref<16xf32, #tpu.memory_space<smem>>
    %126 = vector.broadcast %125 : f32 to vector<8x128xf32>
    %127 = arith.mulf %126, %1 : vector<8x128xf32>
    %c15 = arith.constant 15 : index
    %128 = memref.load %arg2[%c15] : memref<16xf32, #tpu.memory_space<smem>>
    %129 = vector.broadcast %128 : f32 to vector<8x128xf32>
    %130 = arith.mulf %129, %3 : vector<8x128xf32>
    %131 = arith.addf %127, %130 : vector<8x128xf32>
    %c7_27 = arith.constant 7 : index
    %132 = memref.load %arg3[%c7_27] : memref<8xf32, #tpu.memory_space<smem>>
    %133 = vector.broadcast %132 : f32 to vector<8x128xf32>
    %134 = arith.addf %131, %133 : vector<8x128xf32>
    %cst_28 = arith.constant 1.000000e-01 : f32
    %135 = vector.broadcast %cst_28 : f32 to vector<8x128xf32>
    %136 = arith.mulf %135, %134 : vector<8x128xf32>
    %137 = arith.maximumf %134, %136 : vector<8x128xf32>
    %c7_29 = arith.constant 7 : index
    %138 = memref.load %arg4[%c7_29] : memref<8xf32, #tpu.memory_space<smem>>
    %139 = vector.broadcast %138 : f32 to vector<8x128xf32>
    %140 = arith.mulf %139, %137 : vector<8x128xf32>
    %141 = arith.addf %124, %140 : vector<8x128xf32>
    %c0_30 = arith.constant 0 : index
    %c0_31 = arith.constant 0 : index
    %142 = vector.load %arg6[%c0_30, %c0_31] : memref<8x128xf32, #tpu.memory_space<vmem>>, vector<8x128xf32>
    tpu.vector_store %arg6[%c0_30, %c0_31], %141 {strides = array<i32>} : memref<8x128xf32, #tpu.memory_space<vmem>>, vector<8x128xf32>,
    return
  }
  func.func @transform_0(%arg0: i32) -> (i32, i32, i32) {
    %c0_i32 = arith.constant 0 : i32
    %c0_i32_0 = arith.constant 0 : i32
    %c0_i32_1 = arith.constant 0 : i32
    return %c0_i32, %arg0, %c0_i32_0 : i32, i32, i32
  }
  func.func @transform_1(%arg0: i32) -> i32 {
    %c0_i32 = arith.constant 0 : i32
    %c0_i32_0 = arith.constant 0 : i32
    return %c0_i32 : i32
  }
  func.func @transform_2(%arg0: i32) -> i32 {
    %c0_i32 = arith.constant 0 : i32
    %c0_i32_0 = arith.constant 0 : i32
    return %c0_i32 : i32
  }
  func.func @transform_3(%arg0: i32) -> i32 {
    %c0_i32 = arith.constant 0 : i32
    %c0_i32_0 = arith.constant 0 : i32
    return %c0_i32 : i32
  }
  func.func @transform_4(%arg0: i32) -> i32 {
    %c0_i32 = arith.constant 0 : i32
    %c0_i32_0 = arith.constant 0 : i32
    return %c0_i32 : i32
  }
  func.func @transform_5(%arg0: i32) -> (i32, i32) {
    %c0_i32 = arith.constant 0 : i32
    %c0_i32_0 = arith.constant 0 : i32
    return %arg0, %c0_i32 : i32, i32
  }
}

</mosaic_0001>

<bundles_post_ra>
// kernel: tpu_custom_call.1
= control target key start
LH: loop header
LB: loop body
LE: loop exit
PB: predicated region body
PF: predicated region fallthrough
CT: control target
= control target key end

     0   :  { %11 = vsyncpa [#allocation4], 0  ;;  %s451_s0 = inlined_call_operand.hbm [shape: f32[2,8,128], index: 0, kind: input, shape index: {}]   ;;  %s452_s1 = inlined_call_operand.vmem [shape: f32[16], index: 1, kind: input, shape index: {}]   ;;  %s453_s2 = inlined_call_operand.vmem [shape: f32[8], index: 2, kind: input, shape index: {}]   ;;  %s454_s3 = inlined_call_operand.vmem [shape: f32[8], index: 3, kind: input, shape index: {}]   ;;  %s455_s4 = inlined_call_operand.<no memory space> [shape: f32[1], index: 4, kind: input, shape index: {}]   ;;  %s456_s5 = inlined_call_operand.hbm [shape: f32[8,128], index: 5, kind: output, shape index: {}]  }
   0x1   :  { %12 = vsyncpa [#allocation6], 0 }
   0x2   :  { %13 = vsyncpa [#allocation9], 0  ;;  %s43_s20 = sshll.u32 %s453_s2, 4  ;;  %s44_s20 = int_to_ptr.vmem [resolvable:$true] %s43_s20 }
   0x3   :  { %14 = vsyncpa [#allocation5], 0  ;;  %s259_s21 = scalar_lea.vmem %s44_s20, 16  ;;  %p264_p1 = scmp.lt.s32.totalorder %s44_s20, %s44_s20 }
   0x4   :  { %p260_p0 = scmp.ne.s32.totalorder %s44_s20, %s259_s21  ;;  %p265_p2 = scmp.lt.s32.totalorder %s259_s21, %s259_s21 }
   0x6   :  { %p266_p3 = por %p265_p2, %p264_p1 }
   0x8   :  { %p267_p4 = pnand %p266_p3, %p260_p0 }
   0xa   :  { %270 = shalt.err (!%p267_p4)
}
   0xb   :  { %s343_s22 = smov [#allocation8]   ;;  %s344_s23 = smov [#allocation3]  }
   0xc   :  { %46 = dma.vmem_to_smem %s44_s20, 16, %s343_s22, [#allocation9]  }
   0xd   :  { %s20_s24 = sshll.u32 %s344_s23, 4  ;;  %s21_s24 = int_to_ptr.vmem [resolvable:$true] %s20_s24 }
   0xe   :  { %s279_s25 = scalar_lea.vmem %s21_s24, 256  ;;  %p284_p6 = scmp.lt.s32.totalorder %s21_s24, %s21_s24 }
   0xf   :  { %p280_p5 = scmp.ne.s32.totalorder %s21_s24, %s279_s25  ;;  %p285_p7 = scmp.lt.s32.totalorder %s279_s25, %s279_s25 }
  0x11   :  { %p286_p8 = por %p285_p7, %p284_p6 }
  0x13   :  { %p287_p9 = pnand %p286_p8, %p280_p5 }
  0x15   :  { %290 = shalt.err (!%p287_p9)
}
  0x16   :  { %s345_s2 = smov 128   ;;  %s346_s26 = smov 8  }
  0x17   :  { %26 = dma.hbm_to_vmem [thread:$0]  %s451_s0, 256, %s21_s24, [#allocation4], %s345_s2, %s345_s2, %s346_s26  }
  0x18   :  { %s33_s6 = sshll.u32 %s452_s1, 4  ;;  %s53_s9 = sshll.u32 %s454_s3, 4  ;;  %s34_s6 = int_to_ptr.vmem [resolvable:$true] %s33_s6  ;;  %s54_s9 = int_to_ptr.vmem [resolvable:$true] %s53_s9 }
  0x19   :  { %s291_s10 = scalar_lea.vmem %s34_s6, 16  ;;  %p296_p11 = scmp.lt.s32.totalorder %s34_s6, %s34_s6 }
  0x1a   :  { %p292_p10 = scmp.ne.s32.totalorder %s34_s6, %s291_s10  ;;  %p297_p12 = scmp.lt.s32.totalorder %s291_s10, %s291_s10 }
  0x1c   :  { %p298_p13 = por %p297_p12, %p296_p11 }
  0x1e   :  { %p299_p0 = pnand %p298_p13, %p292_p10 }
  0x20   :  { %302 = shalt.err (!%p299_p0)
}
  0x21   :  { %s347_s11 = smov [#allocation7]   ;;  %s303_s0 = scalar_lea.vmem %s54_s9, 16 }
  0x22   :  { %36 = dma.vmem_to_smem %s34_s6, 16, %s347_s11, [#allocation6]  }
  0x23   :  { %p304_p1 = scmp.ne.s32.totalorder %s54_s9, %s303_s0  ;;  %p308_p2 = scmp.lt.s32.totalorder %s54_s9, %s54_s9 }
  0x24   :  { %p309_p3 = scmp.lt.s32.totalorder %s303_s0, %s303_s0 }
  0x26   :  { %p310_p4 = por %p309_p3, %p308_p2 }
  0x28   :  { %p311_p5 = pnand %p310_p4, %p304_p1 }
  0x2a   :  { %314 = shalt.err (!%p311_p5)
}
  0x2b   :  { %s348_s1 = smov [#allocation10]  }
  0x2c   :  { %56 = dma.vmem_to_smem %s54_s9, 16, %s348_s1, [#allocation9]  }
  0x2d   :  { %335 = dma.done.wait [#allocation4], 256  }
  0x2e   :  { %336 = vsyncadd [#allocation4], 4294967040 }
  0x2f   :  { %337 = dma.done.wait [#allocation6], 16  }
  0x30   :  { %338 = vsyncadd [#allocation6], 4294967280 }
  0x31   :  { %339 = dma.done.wait [#allocation9], 32  }
  0x32   :  { %340 = vsyncadd [#allocation9], 4294967264 }
  0x33   :  { %71 = sfence }
  0x34   :  { %s77_s3 = sld [smem:[#allocation7]]  ;;  %v392_v0 = vld [vmem:[#allocation3] sm:$0xff]  ;;  %v394_v1 = vld [vmem:[#allocation3 + $0x8] sm:$0xff]  ;;  %v76_v23 = vstv %s455_s4 }
  0x35   :  { %s223_s12 = sld [smem:[#allocation7 + $0x1]] }
  0x36   :  { %s84_s13 = sld [smem:[#allocation8]] }
  0x37   :  { %s224_s14 = sld [smem:[#allocation7 + $0x2]] }
  0x38   :  { %s225_s15 = sld [smem:[#allocation7 + $0x3]] }
  0x39   :  { %s226_s16 = sld [smem:[#allocation8 + $0x1]] }
  0x3a   :  { %v78_v2 = vstv %s77_s3  ;;  %s397_s17 = sld [smem:[#allocation10]] }
  0x3b   :  { %v79_v3 = vmul.f32 %v78_v2, %v392_v0  ;;  %v81_v4 = vstv %s223_s12  ;;  %s228_s18 = sld [smem:[#allocation7 + $0x4]] }
  0x3c   :  { %v82_v5 = vmul.f32 %v81_v4, %v394_v1  ;;  %v85_v6 = vstv %s84_s13  ;;  %s229_s19 = sld [smem:[#allocation7 + $0x5]] }
  0x3d   :  { %v94_v8 = vstv %s224_s14  ;;  %s400_s20 = sld [smem:[#allocation8 + $0x2]] }
  0x3e   :  { %v83_v7 = vadd.f32 %v82_v5, %v79_v3  ;;  %v95_v9 = vmul.f32 %v94_v8, %v392_v0  ;;  %v97_v10 = vstv %s225_s15  ;;  %s403_s21 = sld [smem:[#allocation10 + $0x1]]  ;;  %s349_s15 = smov [#allocation11]  }
  0x3f   :  { %v98_v12 = vmul.f32 %v97_v10, %v394_v1  ;;  %s232_s22 = sld [smem:[#allocation7 + $0x6]]  ;;  %v101_v13 = vstv %s226_s16  ;;  %s212_s16 = sshll.u32 %s349_s15, 4  ;;  %s213_s16 = int_to_ptr.vmem [resolvable:$true] %s212_s16 }
  0x40   :  { %v86_v11 = vadd.f32 %v85_v6, %v83_v7  ;;  %s233_s23 = sld [smem:[#allocation7 + $0x7]]  ;;  %v90_v17 = vstv %s397_s17  ;;  %s315_s17 = scalar_lea.vmem %s213_s16, 128 }
  0x41   :  { %v99_v15 = vadd.f32 %v98_v12, %v95_v9  ;;  %v110_v16 = vstv %s228_s18  ;;  %s406_s24 = sld [smem:[#allocation8 + $0x3]]  ;;  %p316_p6 = scmp.ne.s32.totalorder %s213_s16, %s315_s17 }
  0x42   :  { %v87_v14 = vmul.f32 0.1, %v86_v11  ;;  %v111_v18 = vmul.f32 %v110_v16, %v392_v0  ;;  %v113_v19 = vstv %s229_s19  ;;  %s410_s25 = sld [smem:[#allocation10 + $0x2]]  ;;  %p320_p7 = scmp.lt.s32.totalorder %s213_s16, %s213_s16 }
  0x43   :  { %v102_v21 = vadd.f32 %v101_v13, %v99_v15  ;;  %v114_v22 = vmul.f32 %v113_v19, %v394_v1  ;;  %s236_s2 = sld [smem:[#allocation7 + $0x8]]  ;;  %v117_v24 = vstv %s400_s20  ;;  %p321_p8 = scmp.lt.s32.totalorder %s315_s17, %s315_s17 }
  0x44   :  { %v88_v20 = vmax.f32 %v86_v11, %v87_v14  ;;  %s237_s28 = sld [smem:[#allocation7 + $0x9]]  ;;  %v106_v29 = vstv %s403_s21 }
  0x45   :  { %v103_v26 = vmul.f32 0.1, %v102_v21  ;;  %v115_v27 = vadd.f32 %v114_v22, %v111_v18  ;;  %v126_v28 = vstv %s232_s22  ;;  %s417_s29 = sld [smem:[#allocation8 + $0x4]]  ;;  %p322_p9 = por %p321_p8, %p320_p7 }
  0x46   :  { %v91_v25 = vmul.f32 %v90_v17, %v88_v20  ;;  %v127_v30 = vmul.f32 %v126_v28, %v392_v0  ;;  %v129_v31 = vstv %s233_s23  ;;  %s421_s30 = sld [smem:[#allocation10 + $0x3]] }
  0x47   :  { %v104_v33 = vmax.f32 %v102_v21, %v103_v26  ;;  %v118_v34 = vadd.f32 %v117_v24, %v115_v27  ;;  %v130_v35 = vmul.f32 %v129_v31, %v394_v1  ;;  %s240_s4 = sld [smem:[#allocation7 + $0xa]]  ;;  %v133_v36 = vstv %s406_s24  ;;  %p323_p10 = pnand %p322_p9, %p316_p6 }
  0x48   :  { %v92_v32 = vadd.f32 %v91_v25, %v76_v23  ;;  %s241_s6 = sld [smem:[#allocation7 + $0xb]]  ;;  %v122_v41 = vstv %s410_s25 }
  0x49   :  { %v107_v37 = vmul.f32 %v106_v29, %v104_v33  ;;  %v119_v38 = vmul.f32 0.1, %v118_v34  ;;  %v131_v39 = vadd.f32 %v130_v35, %v127_v30  ;;  %v142_v40 = vstv %s236_s2  ;;  %s425_s7 = sld [smem:[#allocation8 + $0x5]] }
  0x4a   :  { %v143_v42 = vmul.f32 %v142_v40, %v392_v0  ;;  %v145_v43 = vstv %s237_s28  ;;  %s429_s8 = sld [smem:[#allocation10 + $0x4]] }
  0x4b   :  { %v108_v44 = vadd.f32 %v107_v37, %v92_v32  ;;  %v120_v45 = vmax.f32 %v118_v34, %v119_v38  ;;  %v134_v46 = vadd.f32 %v133_v36, %v131_v39  ;;  %v146_v47 = vmul.f32 %v145_v43, %v394_v1  ;;  %s244_s9 = sld [smem:[#allocation7 + $0xc]] }
  0x4c   :  { %v149_v48 = vstv %s417_s29  ;;  %s245_s10 = sld [smem:[#allocation7 + $0xd]]  ;;  %v138_v53 = vstv %s421_s30 }
  0x4d   :  { %v123_v49 = vmul.f32 %v122_v41, %v120_v45  ;;  %v135_v50 = vmul.f32 0.1, %v134_v46  ;;  %v147_v51 = vadd.f32 %v146_v47, %v143_v42  ;;  %v158_v52 = vstv %s240_s4  ;;  %s433_s11 = sld [smem:[#allocation8 + $0x6]] }
  0x4e   :  { %v159_v54 = vmul.f32 %v158_v52, %v392_v0  ;;  %v161_v55 = vstv %s241_s6  ;;  %s437_s0 = sld [smem:[#allocation10 + $0x5]] }
  0x4f   :  { %v124_v56 = vadd.f32 %v123_v49, %v108_v44  ;;  %v136_v57 = vmax.f32 %v134_v46, %v135_v50  ;;  %v150_v58 = vadd.f32 %v149_v48, %v147_v51  ;;  %v162_v59 = vmul.f32 %v161_v55, %v394_v1  ;;  %s248_s1 = sld [smem:[#allocation7 + $0xe]] }
  0x50   :  { %v165_v60 = vstv %s425_s7  ;;  %s249_s3 = sld [smem:[#allocation7 + $0xf]]  ;;  %v154_v3 = vstv %s429_s8 }
  0x51   :  { %v139_v61 = vmul.f32 %v138_v53, %v136_v57  ;;  %v151_v62 = vmul.f32 0.1, %v150_v58  ;;  %v163_v63 = vadd.f32 %v162_v59, %v159_v54  ;;  %v174_v2 = vstv %s244_s9  ;;  %s250_s12 = sld [smem:[#allocation8 + $0x7]] }
  0x52   :  { %v175_v4 = vmul.f32 %v174_v2, %v392_v0  ;;  %v177_v5 = vstv %s245_s10  ;;  %s247_s13 = sld [smem:[#allocation10 + $0x6]] }
  0x53   :  { %v140_v6 = vadd.f32 %v139_v61, %v124_v56  ;;  %v152_v7 = vmax.f32 %v150_v58, %v151_v62  ;;  %v166_v8 = vadd.f32 %v165_v60, %v163_v63  ;;  %v178_v9 = vmul.f32 %v177_v5, %v394_v1  ;;  %s251_s14 = sld [smem:[#allocation10 + $0x7]] }
  0x54   :  { %v181_v10 = vstv %s433_s11  ;;  %v170_v15 = vstv %s437_s0 }
  0x55   :  { %v155_v11 = vmul.f32 %v154_v3, %v152_v7  ;;  %v167_v12 = vmul.f32 0.1, %v166_v8  ;;  %v179_v13 = vadd.f32 %v178_v9, %v175_v4  ;;  %v190_v14 = vstv %s248_s1 }
  0x56   :  { %v191_v16 = vmul.f32 %v190_v14, %v392_v0  ;;  %v193_v17 = vstv %s249_s3 }
  0x57   :  { %v156_v18 = vadd.f32 %v155_v11, %v140_v6  ;;  %v168_v19 = vmax.f32 %v166_v8, %v167_v12  ;;  %v182_v20 = vadd.f32 %v181_v10, %v179_v13  ;;  %v194_v21 = vmul.f32 %v193_v17, %v394_v1 }
  0x58   :  { %v197_v22 = vstv %s250_s12  ;;  %v186_v26 = vstv %s247_s13 }
  0x59   :  { %v171_v23 = vmul.f32 %v170_v15, %v168_v19  ;;  %v183_v24 = vmul.f32 0.1, %v182_v20  ;;  %v195_v25 = vadd.f32 %v194_v21, %v191_v16  ;;  %v202_v32 = vstv %s251_s14 }
  0x5b   :  { %v172_v27 = vadd.f32 %v171_v23, %v156_v18  ;;  %v184_v28 = vmax.f32 %v182_v20, %v183_v24  ;;  %v198_v29 = vadd.f32 %v197_v22, %v195_v25 }
  0x5d   :  { %v187_v30 = vmul.f32 %v186_v26, %v184_v28  ;;  %v199_v31 = vmul.f32 0.1, %v198_v29 }
  0x5f   :  { %v188_v33 = vadd.f32 %v187_v30, %v172_v27  ;;  %v200_v0 = vmax.f32 %v198_v29, %v199_v31 }
  0x61   :  { %v203_v34 = vmul.f32 %v202_v32, %v200_v0 }
  0x63   :  { %v204_v35 = vadd.f32 %v203_v34, %v188_v33 }
  0x65   :  { %205 = vst [vmem:[#allocation11] sm:$0xff] %v204_v35 }
  0x66   :  { %326 = shalt.err (!%p323_p10)
}
  0x67   :  { %215 = dma.vmem_to_hbm [thread:$0]  %s213_s16, 128, %s456_s5, [#allocation5]  }
  0x68   :  { %341 = dma.done.wait [#allocation5], 128  }
  0x69   :  { %342 = vsyncadd [#allocation5], 4294967168 }
  0x6a   :  { %219 = vsyncpa [#allocation4], 1 }
  0x6b   :  { %220 = vsyncpa [#allocation5], 1 }
  0x6c   :  { %221 = vsyncpa [#allocation6], 1 }
  0x6d   :  { %222 = vsyncpa [#allocation9], 1 }

</bundles_post_ra>
